<compile_context>
chip_gen: v7x
topology: tpu7x:2x2x1
jax: 0.10.0
libtpu: 0.0.40
codegen_flags: <defaults>
</compile_context>

<pallas_src>
import functools

import jax
import jax.numpy as jnp
from jax import lax
from jax.experimental import pallas as pl
from jax.experimental.pallas import tpu as pltpu

_EPS = 1e-8


# --------------------------------------------------------------------------- #
# Kernel bodies
# --------------------------------------------------------------------------- #
def _normalize_chunk(f, matmul_dtype, approx_recip):
    """Per-pixel channel-L2 normalization of a [C, ct] chunk (torch: x/(||x||+eps))."""
    f = f.astype(jnp.float32)
    sumsq = jnp.sum(f * f, axis=0, keepdims=True)               # [1, ct]
    inv = pl.reciprocal(jnp.sqrt(sumsq) + _EPS, approx=approx_recip)
    return (f * inv).astype(matmul_dtype)


def _abt(a, b):
    """a @ b.T with f32 accumulation (contraction over the lane-dense pixel axis)."""
    return lax.dot_general(a, b, (((1,), (1,)), ((), ())),
                           preferred_element_type=jnp.float32)


def _foreach_chunk(fs_ref, ft_ref, ct, n_chunks, process):
    """Apply `process(fs_chunk, ft_chunk)` over lane-axis chunks of the tile."""
    if n_chunks == 1:
        process(fs_ref[0], ft_ref[0])
        return
    # n_chunks is static and small (<= 32): fully unroll so the scheduler sees
    # straight-line code while per-chunk f32 temporaries stay bounded at
    # [C, ct] (equivalent to lax.fori_loop(..., unroll=True)).
    for c in range(n_chunks):
        start = c * ct
        process(fs_ref[0, :, pl.ds(start, ct)],
                ft_ref[0, :, pl.ds(start, ct)])


def _kernel_stacked(fs_ref, ft_ref, out_ref, acc_k, *, C, ct, n_chunks,
                    matmul_dtype, approx_recip):
    """C <= 128 path: single stacked accumulator K = [F_T; F_S][F_T; F_S]^T.

    fs_ref / ft_ref : (1, C, mt) student / teacher tiles (native dtype)
    out_ref         : (1, 8, 128) lane-padded per-(batch,layer) scalar
    acc_k           : (2C, 2C) f32 accumulator
    """
    mi = pl.program_id(1)

    @pl.when(mi == 0)
    def _():
        acc_k[...] = jnp.zeros_like(acc_k)

    def process(fs_c, ft_c):
        ft_n = _normalize_chunk(ft_c, matmul_dtype, approx_recip)
        fs_n = _normalize_chunk(fs_c, matmul_dtype, approx_recip)
        fc = jnp.concatenate([ft_n, fs_n], axis=0)              # [2C, ct]
        acc_k[...] += _abt(fc, fc)

    _foreach_chunk(fs_ref, ft_ref, ct, n_chunks, process)

    @pl.when(mi == pl.num_programs(1) - 1)
    def _():
        k = acc_k[...]                                          # f32 [2C, 2C]
        kk = k * k
        row = lax.broadcasted_iota(jnp.int32, kk.shape, 0)
        col = lax.broadcasted_iota(jnp.int32, kk.shape, 1)
        st_mask = (row >= C) & (col < C)                        # F_S F_T^T block
        # sum(tt^2 + ss^2 - 2 st^2) == sum(K^2) - 4 sum(st^2)
        val = jnp.sum(kk) - 4.0 * jnp.sum(jnp.where(st_mask, kk, 0.0))
        out_ref[...] = jnp.zeros_like(out_ref) + val


def _kernel_split(fs_ref, ft_ref, out_ref, acc_tt, acc_ss, acc_st, *, ct,
                  n_chunks, matmul_dtype, approx_recip):
    """Large / oddly-shaped C path: three C x C accumulators."""
    mi = pl.program_id(1)

    @pl.when(mi == 0)
    def _():
        acc_tt[...] = jnp.zeros_like(acc_tt)
        acc_ss[...] = jnp.zeros_like(acc_ss)
        acc_st[...] = jnp.zeros_like(acc_st)

    def process(fs_c, ft_c):
        ft_n = _normalize_chunk(ft_c, matmul_dtype, approx_recip)
        fs_n = _normalize_chunk(fs_c, matmul_dtype, approx_recip)
        acc_tt[...] += _abt(ft_n, ft_n)
        acc_ss[...] += _abt(fs_n, fs_n)
        acc_st[...] += _abt(fs_n, ft_n)

    _foreach_chunk(fs_ref, ft_ref, ct, n_chunks, process)

    @pl.when(mi == pl.num_programs(1) - 1)
    def _():
        tt = acc_tt[...]
        ss = acc_ss[...]
        st = acc_st[...]
        val = jnp.sum(tt * tt + ss * ss - 2.0 * st * st)
        out_ref[...] = jnp.zeros_like(out_ref) + val


# --------------------------------------------------------------------------- #
# Tiling / budget selection
# --------------------------------------------------------------------------- #
def _round_up(x, m):
    return ((x + m - 1) // m) * m


def _vmem_capacity_bytes():
    try:
        return int(pltpu.get_tpu_info().vmem_capacity_bytes)
    except Exception:
        return 128 << 20                       # v5e/v6e-class default


def _chunk_size(mt):
    if mt <= 512:
        return mt
    for c in (512, 256, 128):
        if mt % c == 0:
            return c
    return mt


def _footprint_bytes(C, mt, ct, itemsize, nbuf, stacked):
    sub = max(32 // itemsize, 8)               # sublane packing granularity
    c_pad = max(_round_up(C, sub), sub)
    in_bytes = 2 * nbuf * c_pad * mt * itemsize        # both inputs, n-buffered
    c_pad32 = max(_round_up(C, 8), 8)
    tmp_bytes = 8 * c_pad32 * ct * 4                   # live per-chunk temporaries
    if stacked:
        acc = _round_up(2 * C, 8) * max(_round_up(2 * C, 128), 128) * 4
    else:
        acc = 3 * _round_up(C, 8) * max(_round_up(C, 128), 128) * 4
    out_bytes = 2 * 8 * 128 * 4
    return in_bytes + tmp_bytes + acc + out_bytes


def _select_tiling(M, C, itemsize, stacked, vmem_cap):
    """Pick pixel-tile size, chunk size, input buffer depth and a VMEM limit."""
    budget = int(0.55 * vmem_cap)              # headroom for Mosaic-internal scratch
    margin = 4 << 20

    cands = []
    if M % 128 == 0:
        cands.append(M)                        # full pixel extent in one tile
    cands.extend(t for t in (16384, 8192, 4096, 2048, 1024, 512, 256, 128)
                 if t < M and M % t == 0)

    mt = None
    for t in cands:
        if _footprint_bytes(C, t, _chunk_size(t), itemsize, 2, stacked) + margin <= budget:
            mt = t
            break
    if mt is None:
        mt = 128 if M % 128 == 0 else M        # tiny / misaligned spatial extents

    ct = _chunk_size(mt)
    nbuf = 2
    if (mt >= 512 and
            _footprint_bytes(C, mt, ct, itemsize, 3, stacked) + margin <= budget):
        nbuf = 3                               # hide DMA ramp in the HBM-bound regime

    need = _footprint_bytes(C, mt, ct, itemsize, nbuf, stacked) + (6 << 20)
    vmem_limit = int(min(max(need, 32 << 20), int(0.85 * vmem_cap)))
    return mt, ct, nbuf, vmem_limit


# --------------------------------------------------------------------------- #
# Public wrapper
# --------------------------------------------------------------------------- #
def pairwise_loss(preds_S, preds_T, *, matmul_dtype=jnp.bfloat16):
    """JAX/Pallas equivalent of the PyTorch module's forward.

    preds_S, preds_T: [N, L, C, H, W]  (any float dtype; kept native in HBM).
    Returns a scalar f32 loss.  The module's `scale` / `feat_ind` do not affect
    the returned value (patch_w/patch_h are computed but unused upstream).
    """
    assert preds_S.shape == preds_T.shape
    N, L, C, H, W = preds_S.shape
    M = H * W
    BL = N * L

    fs = preds_S.reshape(BL, C, M)
    ft = preds_T.reshape(BL, C, M)

    # Zero-pad a large, lane-misaligned pixel axis up to a multiple of 128.
    # Exact: zero columns normalize to exactly 0 and contribute nothing.
    M_pad = M
    if M % 128 != 0 and M > 1024:
        M_pad = _round_up(M, 128)
        pad = ((0, 0), (0, 0), (0, M_pad - M))
        fs = jnp.pad(fs, pad)
        ft = jnp.pad(ft, pad)

    itemsize = jnp.dtype(preds_S.dtype).itemsize
    approx_recip = jnp.dtype(matmul_dtype) != jnp.dtype(jnp.float32)

    # Stacked (2C x 2C) path: better MXU packing + 1 accumulator RMW for
    # small/medium C; requires sublane-aligned halves for the in-kernel stack.
    stacked = (C <= 128) and (C % 16 == 0)

    vmem_cap = _vmem_capacity_bytes()
    mt, ct, nbuf, vmem_limit = _select_tiling(M_pad, C, itemsize, stacked, vmem_cap)
    n_chunks = mt // ct

    if stacked:
        kernel = functools.partial(_kernel_stacked, C=C, ct=ct, n_chunks=n_chunks,
                                   matmul_dtype=matmul_dtype,
                                   approx_recip=approx_recip)
        scratch = [pltpu.VMEM((2 * C, 2 * C), jnp.float32)]
    else:
        kernel = functools.partial(_kernel_split, ct=ct, n_chunks=n_chunks,
                                   matmul_dtype=matmul_dtype,
                                   approx_recip=approx_recip)
        scratch = [pltpu.VMEM((C, C), jnp.float32) for _ in range(3)]

    index_map = lambda b, m: (b, 0, m)

    def _run(in_specs):
        return pl.pallas_call(
            kernel,
            out_shape=jax.ShapeDtypeStruct((BL, 8, 128), jnp.float32),
            grid_spec=pltpu.PrefetchScalarGridSpec(
                num_scalar_prefetch=0,
                grid=(BL, M_pad // mt),
                in_specs=list(in_specs),
                out_specs=pl.BlockSpec((1, 8, 128), lambda b, m: (b, 0, 0)),
                scratch_shapes=scratch,
            ),
            compiler_params=pltpu.CompilerParams(
                dimension_semantics=("parallel", "arbitrary"),
                vmem_limit_bytes=vmem_limit,
            ),
        )(fs, ft)

    # TODO(synk): when BL == 1 on a multi-TensorCore chip (v7x), split the pixel
    # axis "parallel" and combine raw accumulators in the wrapper to use both
    # cores; not implemented (BL = N*L >= 2 for realistic distillation batches).
    out = None
    if nbuf >= 3 and hasattr(pl, "Buffered"):
        try:
            buffered = [pl.BlockSpec((1, C, mt), index_map,
                                     pipeline_mode=pl.Buffered(nbuf))
                        for _ in range(2)]
            out = _run(buffered)
        except Exception:
            out = None                          # fall back to default 2-deep buffering
    if out is None:
        out = _run([pl.BlockSpec((1, C, mt), index_map) for _ in range(2)])

    per_slice = out[:, 0, 0]                    # [BL] = ||G_T - G_S||_F^2 per slice
    scale = 1.0 / (float(M) ** 2) / float(N) / float(L)
    return jnp.sum(per_slice) * scale


# --------------------------------------------------------------------------- #
# Plain-JAX reference (mirrors the PyTorch code, builds the M x M Grams)
# --------------------------------------------------------------------------- #
def _reference_loss(preds_S, preds_T):
    N, L, C, H, W = preds_S.shape
    M = H * W

    def similarity(feat):                       # feat: [N, C, H, W]
        feat = feat.astype(jnp.float32)
        tmp = jnp.sqrt(jnp.sum(feat ** 2, axis=1, keepdims=True)) + 1e-8
        feat = (feat / tmp).reshape(N, C, M)
        return jnp.einsum('icm,icn->imn', feat, feat,
                          precision=jax.lax.Precision.HIGHEST)

    loss_sum = 0.0
    for i in range(L):
        sim_err = (similarity(preds_T[:, i]) - similarity(preds_S[:, i])) ** 2
        loss_sum = loss_sum + jnp.sum(sim_err / (M ** 2) / N)
    return loss_sum / L


if __name__ == "__main__":
    key = jax.random.PRNGKey(0)
    ks = jax.random.split(key, 6)

    # 1) Tiny toy shape (split-accumulator path, single pixel chunk).
    N, L, C, H, W = 2, 3, 4, 8, 8
    s1 = jax.random.normal(ks[0], (N, L, C, H, W), dtype=jnp.float32)
    t1 = jax.random.normal(ks[1], (N, L, C, H, W), dtype=jnp.float32)
    ref1 = jax.block_until_ready(_reference_loss(s1, t1))
    got1_f32 = jax.block_until_ready(pairwise_loss(s1, t1, matmul_dtype=jnp.float32))
    assert jnp.allclose(got1_f32, ref1, rtol=1e-4, atol=1e-5), (got1_f32, ref1)
    got1 = jax.block_until_ready(pairwise_loss(s1, t1))
    assert jnp.allclose(got1, ref1, rtol=5e-2, atol=1e-3), (got1, ref1)

    # 2) C = 64: stacked (2C x 2C) kernel, chunked pixel loop, buffered inputs.
    N, L, C, H, W = 2, 1, 64, 32, 32
    s2 = jax.random.normal(ks[2], (N, L, C, H, W), dtype=jnp.float32)
    t2 = jax.random.normal(ks[3], (N, L, C, H, W), dtype=jnp.float32)
    ref2 = jax.block_until_ready(_reference_loss(s2, t2))
    got2_f32 = jax.block_until_ready(pairwise_loss(s2, t2, matmul_dtype=jnp.float32))
    assert jnp.allclose(got2_f32, ref2, rtol=1e-3, atol=1e-6), (got2_f32, ref2)
    got2 = jax.block_until_ready(pairwise_loss(s2, t2))
    assert jnp.allclose(got2, ref2, rtol=5e-2, atol=1e-4), (got2, ref2)

    # 3) C = 256: three-accumulator path with chunked pixel loop.
    N, L, C, H, W = 1, 1, 256, 32, 32
    s3 = jax.random.normal(ks[4], (N, L, C, H, W), dtype=jnp.float32)
    t3 = jax.random.normal(ks[5], (N, L, C, H, W), dtype=jnp.float32)
    ref3 = jax.block_until_ready(_reference_loss(s3, t3))
    got3_f32 = jax.block_until_ready(pairwise_loss(s3, t3, matmul_dtype=jnp.float32))
    assert jnp.allclose(got3_f32, ref3, rtol=1e-3, atol=1e-6), (got3_f32, ref3)
    got3 = jax.block_until_ready(pairwise_loss(s3, t3))
    assert jnp.allclose(got3, ref3, rtol=5e-2, atol=1e-4), (got3, ref3)

    print("KERNEL_OK")
</pallas_src>

<mosaic_0001>
module attributes {stable_mosaic.version = 11 : i64} {
  func.func @_kernel_split(%arg0: i32, %arg1: i32, %arg2: memref<1x4x64xf32, #tpu.memory_space<vmem>>, %arg3: memref<1x4x64xf32, #tpu.memory_space<vmem>>, %arg4: memref<1x8x128xf32, #tpu.memory_space<vmem>>, %arg5: memref<4x4xf32, #tpu.memory_space<vmem>>, %arg6: memref<4x4xf32, #tpu.memory_space<vmem>>, %arg7: memref<4x4xf32, #tpu.memory_space<vmem>>) attributes {dimension_semantics = [#tpu.dimension_semantics<parallel>, #tpu.dimension_semantics<arbitrary>], iteration_bounds = array<i64: 6, 1>, scalar_prefetch = 0 : i64, scratch_operands = 3 : i64, tpu.core_type = #tpu.core_type<tc>, window_params = [{transform_indices = @transform_0, window_bounds = array<i64: 1, 4, 64>}, {transform_indices = @transform_1, window_bounds = array<i64: 1, 4, 64>}, {transform_indices = @transform_2, window_bounds = array<i64: 1, 8, 128>}]} {
    %c0_i32 = arith.constant 0 : i32
    %0 = arith.cmpi eq, %arg1, %c0_i32 : i32
    %1 = arith.extui %0 : i1 to i32
    %c0_i32_0 = arith.constant 0 : i32
    %2 = arith.cmpi ne, %1, %c0_i32_0 : i32
    scf.if %2 {
      %cst_26 = arith.constant 0.000000e+00 : f32
      %40 = vector.broadcast %cst_26 : f32 to vector<4x4xf32>
      %c0_27 = arith.constant 0 : index
      %c0_28 = arith.constant 0 : index
      %41 = vector.load %arg5[%c0_27, %c0_28] : memref<4x4xf32, #tpu.memory_space<vmem>>, vector<4x4xf32>
      tpu.vector_store %arg5[%c0_27, %c0_28], %40 {strides = array<i32>} : memref<4x4xf32, #tpu.memory_space<vmem>>, vector<4x4xf32>,
      %cst_29 = arith.constant 0.000000e+00 : f32
      %42 = vector.broadcast %cst_29 : f32 to vector<4x4xf32>
      %c0_30 = arith.constant 0 : index
      %c0_31 = arith.constant 0 : index
      %43 = vector.load %arg6[%c0_30, %c0_31] : memref<4x4xf32, #tpu.memory_space<vmem>>, vector<4x4xf32>
      tpu.vector_store %arg6[%c0_30, %c0_31], %42 {strides = array<i32>} : memref<4x4xf32, #tpu.memory_space<vmem>>, vector<4x4xf32>,
      %cst_32 = arith.constant 0.000000e+00 : f32
      %44 = vector.broadcast %cst_32 : f32 to vector<4x4xf32>
      %c0_33 = arith.constant 0 : index
      %c0_34 = arith.constant 0 : index
      %45 = vector.load %arg7[%c0_33, %c0_34] : memref<4x4xf32, #tpu.memory_space<vmem>>, vector<4x4xf32>
      tpu.vector_store %arg7[%c0_33, %c0_34], %44 {strides = array<i32>} : memref<4x4xf32, #tpu.memory_space<vmem>>, vector<4x4xf32>,
    } else {
    }
    %c0 = arith.constant 0 : index
    %c0_1 = arith.constant 0 : index
    %c0_2 = arith.constant 0 : index
    %3 = vector.load %arg2[%c0, %c0_1, %c0_2] : memref<1x4x64xf32, #tpu.memory_space<vmem>>, vector<1x4x64xf32>
    %4 = vector.shape_cast %3 : vector<1x4x64xf32> to vector<4x64xf32>
    %c0_3 = arith.constant 0 : index
    %c0_4 = arith.constant 0 : index
    %c0_5 = arith.constant 0 : index
    %5 = vector.load %arg3[%c0_3, %c0_4, %c0_5] : memref<1x4x64xf32, #tpu.memory_space<vmem>>, vector<1x4x64xf32>
    %6 = vector.shape_cast %5 : vector<1x4x64xf32> to vector<4x64xf32>
    %7 = arith.mulf %6, %6 : vector<4x64xf32>
    %cst = arith.constant dense<0.000000e+00> : vector<64xf32>
    %8 = vector.multi_reduction <add>, %7, %cst [0] : vector<4x64xf32> to vector<64xf32>
    %9 = vector.shape_cast %8 : vector<64xf32> to vector<1x64xf32>
    %10 = math.sqrt %9 : vector<1x64xf32>
    %cst_6 = arith.constant 9.99999993E-9 : f32
    %11 = vector.broadcast %cst_6 : f32 to vector<1x64xf32>
    %12 = arith.addf %10, %11 : vector<1x64xf32>
    %13 = tpu.reciprocal %12 : vector<1x64xf32> -> vector<1x64xf32>
    %14 = vector.broadcast %13 : vector<1x64xf32> to vector<4x64xf32>
    %15 = arith.mulf %6, %14 : vector<4x64xf32>
    %16 = arith.mulf %4, %4 : vector<4x64xf32>
    %cst_7 = arith.constant dense<0.000000e+00> : vector<64xf32>
    %17 = vector.multi_reduction <add>, %16, %cst_7 [0] : vector<4x64xf32> to vector<64xf32>
    %18 = vector.shape_cast %17 : vector<64xf32> to vector<1x64xf32>
    %19 = math.sqrt %18 : vector<1x64xf32>
    %cst_8 = arith.constant 9.99999993E-9 : f32
    %20 = vector.broadcast %cst_8 : f32 to vector<1x64xf32>
    %21 = arith.addf %19, %20 : vector<1x64xf32>
    %22 = tpu.reciprocal %21 : vector<1x64xf32> -> vector<1x64xf32>
    %23 = vector.broadcast %22 : vector<1x64xf32> to vector<4x64xf32>
    %24 = arith.mulf %4, %23 : vector<4x64xf32>
    %c0_9 = arith.constant 0 : index
    %c0_10 = arith.constant 0 : index
    %25 = vector.load %arg5[%c0_9, %c0_10] : memref<4x4xf32, #tpu.memory_space<vmem>>, vector<4x4xf32>
    %cst_11 = arith.constant dense<0.000000e+00> : vector<4x4xf32>
    %26 = tpu.matmul %15, %15, %cst_11 {dimension_numbers = #tpu.dot_dimension_numbers<[1], [1], [0], [0], [0, 0, 1, 0], [], []>} : vector<4x64xf32>, vector<4x64xf32>, vector<4x4xf32> -> vector<4x4xf32>
    %27 = arith.addf %25, %26 : vector<4x4xf32>
    %c0_12 = arith.constant 0 : index
    %c0_13 = arith.constant 0 : index
    %28 = vector.load %arg5[%c0_12, %c0_13] : memref<4x4xf32, #tpu.memory_space<vmem>>, vector<4x4xf32>
    tpu.vector_store %arg5[%c0_12, %c0_13], %27 {strides = array<i32>} : memref<4x4xf32, #tpu.memory_space<vmem>>, vector<4x4xf32>,
    %c0_14 = arith.constant 0 : index
    %c0_15 = arith.constant 0 : index
    %29 = vector.load %arg6[%c0_14, %c0_15] : memref<4x4xf32, #tpu.memory_space<vmem>>, vector<4x4xf32>
    %cst_16 = arith.constant dense<0.000000e+00> : vector<4x4xf32>
    %30 = tpu.matmul %24, %24, %cst_16 {dimension_numbers = #tpu.dot_dimension_numbers<[1], [1], [0], [0], [0, 0, 1, 0], [], []>} : vector<4x64xf32>, vector<4x64xf32>, vector<4x4xf32> -> vector<4x4xf32>
    %31 = arith.addf %29, %30 : vector<4x4xf32>
    %c0_17 = arith.constant 0 : index
    %c0_18 = arith.constant 0 : index
    %32 = vector.load %arg6[%c0_17, %c0_18] : memref<4x4xf32, #tpu.memory_space<vmem>>, vector<4x4xf32>
    tpu.vector_store %arg6[%c0_17, %c0_18], %31 {strides = array<i32>} : memref<4x4xf32, #tpu.memory_space<vmem>>, vector<4x4xf32>,
    %c0_19 = arith.constant 0 : index
    %c0_20 = arith.constant 0 : index
    %33 = vector.load %arg7[%c0_19, %c0_20] : memref<4x4xf32, #tpu.memory_space<vmem>>, vector<4x4xf32>
    %cst_21 = arith.constant dense<0.000000e+00> : vector<4x4xf32>
    %34 = tpu.matmul %24, %15, %cst_21 {dimension_numbers = #tpu.dot_dimension_numbers<[1], [1], [0], [0], [0, 0, 1, 0], [], []>} : vector<4x64xf32>, vector<4x64xf32>, vector<4x4xf32> -> vector<4x4xf32>
    %35 = arith.addf %33, %34 : vector<4x4xf32>
    %c0_22 = arith.constant 0 : index
    %c0_23 = arith.constant 0 : index
    %36 = vector.load %arg7[%c0_22, %c0_23] : memref<4x4xf32, #tpu.memory_space<vmem>>, vector<4x4xf32>
    tpu.vector_store %arg7[%c0_22, %c0_23], %35 {strides = array<i32>} : memref<4x4xf32, #tpu.memory_space<vmem>>, vector<4x4xf32>,
    %c0_i32_24 = arith.constant 0 : i32
    %37 = arith.cmpi eq, %arg1, %c0_i32_24 : i32
    %38 = arith.extui %37 : i1 to i32
    %c0_i32_25 = arith.constant 0 : i32
    %39 = arith.cmpi ne, %38, %c0_i32_25 : i32
    scf.if %39 {
      %c0_26 = arith.constant 0 : index
      %c0_27 = arith.constant 0 : index
      %40 = vector.load %arg5[%c0_26, %c0_27] : memref<4x4xf32, #tpu.memory_space<vmem>>, vector<4x4xf32>
      %c0_28 = arith.constant 0 : index
      %c0_29 = arith.constant 0 : index
      %41 = vector.load %arg6[%c0_28, %c0_29] : memref<4x4xf32, #tpu.memory_space<vmem>>, vector<4x4xf32>
      %c0_30 = arith.constant 0 : index
      %c0_31 = arith.constant 0 : index
      %42 = vector.load %arg7[%c0_30, %c0_31] : memref<4x4xf32, #tpu.memory_space<vmem>>, vector<4x4xf32>
      %43 = arith.mulf %40, %40 : vector<4x4xf32>
      %44 = arith.mulf %41, %41 : vector<4x4xf32>
      %45 = arith.addf %43, %44 : vector<4x4xf32>
      %cst_32 = arith.constant 2.000000e+00 : f32
      %46 = vector.broadcast %cst_32 : f32 to vector<4x4xf32>
      %47 = arith.mulf %46, %42 : vector<4x4xf32>
      %48 = arith.mulf %47, %42 : vector<4x4xf32>
      %49 = arith.subf %45, %48 : vector<4x4xf32>
      %50 = vector.shape_cast %49 : vector<4x4xf32> to vector<1x4x4xf32>
      %cst_33 = arith.constant dense<0.000000e+00> : vector<1xf32>
      %51 = vector.multi_reduction <add>, %50, %cst_33 [1, 2] : vector<1x4x4xf32> to vector<1xf32>
      %52 = vector.shape_cast %51 : vector<1xf32> to vector<1x1x1xf32>
      %53 = vector.extract %52[0, 0, 0] : f32 from vector<1x1x1xf32>
      %cst_34 = arith.constant 0.000000e+00 : f32
      %54 = vector.broadcast %cst_34 : f32 to vector<1x8x128xf32>
      %55 = vector.broadcast %53 : f32 to vector<1x8x128xf32>
      %56 = arith.addf %54, %55 : vector<1x8x128xf32>
      %c0_35 = arith.constant 0 : index
      %c0_36 = arith.constant 0 : index
      %c0_37 = arith.constant 0 : index
      %57 = vector.load %arg4[%c0_35, %c0_36, %c0_37] : memref<1x8x128xf32, #tpu.memory_space<vmem>>, vector<1x8x128xf32>
      tpu.vector_store %arg4[%c0_35, %c0_36, %c0_37], %56 {strides = array<i32>} : memref<1x8x128xf32, #tpu.memory_space<vmem>>, vector<1x8x128xf32>,
    } else {
    }
    return
  }
  func.func @transform_0(%arg0: i32, %arg1: i32) -> (i32, i32, i32) {
    %c0_i32 = arith.constant 0 : i32
    %c0_i32_0 = arith.constant 0 : i32
    return %arg0, %c0_i32, %arg1 : i32, i32, i32
  }
  func.func @transform_1(%arg0: i32, %arg1: i32) -> (i32, i32, i32) {
    %c0_i32 = arith.constant 0 : i32
    %c0_i32_0 = arith.constant 0 : i32
    return %arg0, %c0_i32, %arg1 : i32, i32, i32
  }
  func.func @transform_2(%arg0: i32, %arg1: i32) -> (i32, i32, i32) {
    %c0_i32 = arith.constant 0 : i32
    %c0_i32_0 = arith.constant 0 : i32
    %c0_i32_1 = arith.constant 0 : i32
    return %arg0, %c0_i32, %c0_i32_0 : i32, i32, i32
  }
}

</mosaic_0001>

<bundles_post_ra>
// kernel: tpu_custom_call.1
= control target key start
LH: loop header
LB: loop body
LE: loop exit
PB: predicated region body
PF: predicated region fallthrough
CT: control target
= control target key end

     0   :  { %7 = vsyncpa [#allocation6], 0  ;;  %s1149_s0 = inlined_call_operand.hbm [shape: f32[6,4,64], index: 0, kind: input, shape index: {}]   ;;  %s1150_s1 = inlined_call_operand.hbm [shape: f32[6,4,64], index: 1, kind: input, shape index: {}]   ;;  %s1151_s2 = inlined_call_operand.hbm [shape: f32[6,8,128], index: 2, kind: output, shape index: {}]  }
   0x1   :  { %9 = vsyncpa [#allocation6 + $0x1], 0 }
   0x2   :  { %10 = vsyncpa [#allocation9], 0 }
   0x3   :  { %12 = vsyncpa [#allocation9 + $0x1], 0 }
   0x4   :  { %13 = vsyncpa [#allocation7], 0 }
   0x5   :  { %15 = vsyncpa [#allocation7 + $0x1], 0  ;;  %s920_s9 = smov 0   ;;  %s922_s10 = smov 0  }
   0x6   :  { %s924_s11 = smov 0   ;;  %s926_s12 = smov 0  }
   0x7   :  { %s928_s13 = smov 0   ;;  %s930_s14 = smov 0  }
   0x8 LB: > { %s630_s15 = sadd.s32 4294967295, %s898_s14   ;;  %s631_s16 = sadd.s32 4294967294, %s898_s14   ;;  %s898_s14 = sphi %s930_s14, %s21_s14   ;;  %s894_s13 = sphi %s928_s13, %s1170_s13   ;;  %s890_s12 = sphi %s926_s12, %s1169_s12   ;;  %s886_s11 = sphi %s924_s11, %s1168_s11   ;;  %s882_s10 = sphi %s922_s10, %s1167_s10   ;;  %s878_s9 = sphi %s920_s9, %s1166_s9  }
   0x9   : > { %s33_s17 = sadd.s32 1, %s894_s13  ;;  %s42_s18 = sadd.s32 1, %s886_s11 }
   0xa   : > { %p35_p0 = scmp.ge.s32.totalorder %s33_s17, 6  ;;  %p49_p1 = scmp.ne.s32.totalorder %s886_s11, %s882_s10 }
   0xb   : > { %p50_p2 = scmp.eq.s32.totalorder %s898_s14, 0  ;;  %p55_p3 = scmp.ne.s32.totalorder %s882_s10, %s878_s9 }
   0xc   : > { %s1172_s17 = smov (%p35_p0, %s33_s17), 0  ;;  %p56_p5 = scmp.eq.s32.totalorder %s630_s15, 0 }
   0xd   : > { %p961_p4 = por %p50_p2, %p49_p1  ;;  %s37_s20 = ssub.s32 %s894_s13, %s1172_s17 }
   0xe   : > { %p107_p6 = scmp.eq.s32.totalorder %s630_s15, 5  ;;  %p40_p7 = scmp.eq.s32.totalorder %s37_s20, 0 }
   0xf   : > { %p967_p8 = por %p56_p5, %p55_p3  ;;  %p113_p10 = scmp.eq.s32.totalorder %s631_s16, 5 }
  0x10   : > { %p971_p9 = por %p107_p6, %p49_p1  ;;  %p692_p12 = scmp.lt.s32.totalorder %s898_s14, 6 }
  0x11   : > { %s1155_s21 = scalar_select %p967_p8, 1, 0 }
  0x12   : > { %s1156_s22 = scalar_select %p971_p9, 1, 0 }
  0x13   : > { %s976_s23 = scalar_select %p40_p7, %s886_s11, %s42_s18  }
  0x14   : > { %p978_p11 = por %p113_p10, %p55_p3  ;;  %s984_s25 = sand.u32 1, %s886_s11  }
  0x15   : > { %s634_s26 = sshll.u32 %s984_s25, 2  ;;  %s635_s27 = sshll.u32 %s894_s13, 6 }
  0x16   : > { %s1157_s24 = scalar_select %p978_p11, 1, 0 }
  0x17   : > { %s993_s30 = scalar_lea.hbm %s1149_s0, %s635_s27  ;;  %s137_s3 = scalar_lea.vmem [#allocation5], %s634_s26 }
  0x18   : > { %s145_s4 = sshll.u32 %s137_s3, 4  ;;  %p1001_p13 = pnand %p692_p12, %p961_p4  ;;  %s997_s4 = int_to_ptr.vmem [resolvable:$true] %s145_s4 }
  0x19   : > { %s134_s6 = scalar_lea.sflag [#allocation6], %s984_s25  ;;  %s752_s7 = scalar_lea.hbm %s993_s30, 64 }
  0x1a   : > { %p753_p2 = scmp.ne.s32.totalorder %s993_s30, %s752_s7  ;;  %p754_p3 = pneg %p1001_p13 }
  0x1b   : > { %s757_s16 = scalar_lea.hbm %s1149_s0, 384  ;;  %p758_p4 = scmp.lt.u32.totalorder %s993_s30, %s1149_s0 }
  0x1c   : > { %p755_p5 = pnand %p754_p3, %p753_p2  ;;  %p759_p7 = scmp.lt.u32.totalorder %s757_s16, %s752_s7 }
  0x1d   : > { %p761_p12 = scmp.lt.u32.totalorder %s752_s7, %s993_s30 }
  0x1e   : > { %p756_p6 = pneg %p755_p5  ;;  %p760_p10 = por %p759_p7, %p758_p4 }
  0x20   : > { %p762_p0 = por %p761_p12, %p760_p10 }
  0x22   : > { %p763_p1 = pnand %p762_p0, %p756_p6 }
  0x24   : > { %766 = shalt.err (!%p763_p1)
}
  0x25   : > { %s767_s20 = scalar_lea.vmem %s997_s4, 64  ;;  %s900_s28 = smov [#allocation5]  }
  0x26   : > { %p768_p2 = scmp.ne.s32.totalorder %s997_s4, %s767_s20  ;;  %s772_s29 = sshll.u32 %s900_s28, 4  ;;  %s773_s29 = int_to_ptr.vmem [resolvable:$false] %s772_s29 }
  0x27   : > { %s774_s3 = scalar_lea.vmem %s773_s29, 128  ;;  %p775_p9 = scmp.lt.s32.totalorder %s997_s4, %s773_s29 }
  0x28   : > { %p770_p5 = pnand %p768_p2, %p754_p3  ;;  %p776_p4 = scmp.lt.s32.totalorder %s774_s3, %s767_s20 }
  0x2a   : > { %p771_p11 = pneg %p770_p5  ;;  %p777_p7 = por %p776_p4, %p775_p9 }
  0x2c   : > { %p778_p10 = pnand %p777_p7, %p771_p11 }
  0x2e   : > { %781 = shalt.err (!%p778_p10)
}
  0x2f   : > { %684 = dma.hbm_to_vmem [thread:$0]  (!%p1001_p13), %s993_s30, 64, %s997_s4, %s134_s6  }
  0x30   : > { %p1159_p0 = scmp.lt.s32.totalorder %s898_s14, 7  ;;  %p1160_p1 = scmp.ge.s32.totalorder %s898_s14, 1 }
  0x31   : > { %s1046_s16 = scalar_lea.hbm %s1150_s1, %s635_s27  ;;  %s156_s18 = scalar_lea.vmem [#allocation8], %s634_s26 }
  0x32   : > { %p1037_p6 = pnand %p1160_p1, %p1159_p0  ;;  %s164_s19 = sshll.u32 %s156_s18, 4  ;;  %s165_s19 = int_to_ptr.vmem [resolvable:$true] %s164_s19 }
  0x33   : > { %s153_s30 = scalar_lea.sflag [#allocation9], %s984_s25  ;;  %s782_s4 = scalar_lea.hbm %s1046_s16, 64 }
  0x34   : > { %s1161_s7 = scalar_select %p1037_p6, 1, 0 }
  0x35   : > { %p783_p9 = scmp.ne.s32.totalorder %s1046_s16, %s782_s4  ;;  %s787_s27 = scalar_lea.hbm %s1150_s1, 384 }
  0x36   : > { %p788_p2 = scmp.lt.u32.totalorder %s1046_s16, %s1150_s1  ;;  %p789_p5 = scmp.lt.u32.totalorder %s787_s27, %s782_s4 }
  0x37   : > { %p785_p11 = pnand %p783_p9, %p754_p3  ;;  %p791_p7 = scmp.lt.u32.totalorder %s782_s4, %s1046_s16 }
  0x38   : > { %p790_p4 = por %p789_p5, %p788_p2 }
  0x39   : > { %p786_p12 = pneg %p785_p11 }
  0x3a   : > { %p792_p10 = por %p791_p7, %p790_p4 }
  0x3c   : > { %p793_p0 = pnand %p792_p10, %p786_p12 }
  0x3e   : > { %796 = shalt.err (!%p793_p0)
}
  0x3f   : > { %s797_s25 = scalar_lea.vmem %s165_s19, 64  ;;  %s901_s26 = smov [#allocation8]  }
  0x40   : > { %p798_p1 = scmp.ne.s32.totalorder %s165_s19, %s797_s25  ;;  %s802_s3 = sshll.u32 %s901_s26, 4  ;;  %s803_s3 = int_to_ptr.vmem [resolvable:$false] %s802_s3 }
  0x41   : > { %s804_s8 = scalar_lea.vmem %s803_s3, 128  ;;  %p805_p8 = scmp.lt.s32.totalorder %s165_s19, %s803_s3 }
  0x42   : > { %p800_p9 = pnand %p798_p1, %p754_p3  ;;  %p806_p6 = scmp.lt.s32.totalorder %s804_s8, %s797_s25 }
  0x44   : > { %p801_p11 = pneg %p800_p9  ;;  %p807_p2 = por %p806_p6, %p805_p8 }
  0x46   : > { %p808_p5 = pnand %p807_p2, %p801_p11 }
  0x48   : > { %811 = shalt.err (!%p808_p5)
}
  0x49   : > { %687 = dma.hbm_to_vmem [thread:$0]  (!%p1001_p13), %s1046_s16, 64, %s165_s19, %s153_s30  }
  0x4a   : > { %p1162_p12 = scmp.ne.s32.totalorder %s1161_s7, 0 }
  0x4b   : > { %s1073_s15 = sand.u32 (!%p1162_p12), 1, %s882_s10   ;;  %p1163_p3 = scmp.ne.s32.totalorder (!%p1162_p12), %s1155_s21, 0 }
  0x4c   : > { %173 = sbr.rel (%p1162_p12) target bundleno = 587 (0x24b), region = 28  ;;  %s639_s18 = sshll.u32 (!%p1162_p12), %s1073_s15, 2 }
  0x4d   : > { %s176_s4 = scalar_lea.sflag (!%p1162_p12), [#allocation6], %s1073_s15  ;;  %s179_s6 = scalar_lea.vmem (!%p1162_p12), [#allocation5], %s639_s18 }
  0x53   : > { %865 = dma.done.wait (%p1163_p3), %s176_s4, 64  }
  0x54   : > { %867 = vsyncadd (%p1163_p3), %s176_s4, 4294967232  ;;  %s185_s5 = scalar_lea.sflag [#allocation9], %s1073_s15  ;;  %s188_s16 = scalar_lea.vmem [#allocation8], %s639_s18 }
  0x55   : > { %869 = dma.done.wait (%p1163_p3), %s185_s5, 64  }
  0x56   : > { %871 = vsyncadd (%p1163_p3), %s185_s5, 4294967232  ;;  %v902_v0 = vmov 0.0   ;;  %vm218_vm0 = vcmask 27648   ;;  %vm903_vm1 = vmmov 0   ;;  %v223_v1 = vld [vmem:[%s188_s16] sm:$0xf] }
  0x57   : > { %658 = vmatprep.subr.mxu0 %v902_v0  ;;  %663 = vmatprep.subr.mxu1 %v902_v0  ;;  %219 = vst.msk [vmem:[#allocation2] sm:$0xf] %vm218_vm0, %v902_v0  ;;  %220 = vst.msk [vmem:[#allocation3] sm:$0xf] %vm218_vm0, %v902_v0  ;;  %vm225_vm2 = vcmask 519168   ;;  %v224_v3 = vmul.f32 %v223_v1, %v223_v1  ;;  %vm262_vm7 = vcmask 523264  }
  0x58   : > { %660 = vmatprep.mubr.msk.f32.mxu0 %vm903_vm1, %v902_v0  ;;  %665 = vmatprep.mubr.msk.f32.mxu1 %vm903_vm1, %v902_v0  ;;  %221 = vst.msk [vmem:[#allocation4] sm:$0xf] %vm218_vm0, %v902_v0  ;;  %v222_v2 = vld [vmem:[%s179_s6] sm:$0xf]  ;;  %s641_s21 = sshll.u32 %s1073_s15, 3  ;;  %s649_s30 = sshll.u32 %s890_s12, 7 }
  0x59   : > { %v243_v4 = vmul.f32 %v222_v2, %v222_v2  ;;  %v226_v5 = vsel %vm225_vm2, %v224_v3, 0.0  ;;  %s213_s7 = scalar_lea.vmem [#allocation10], %s641_s21  ;;  %s1103_s29 = scalar_lea.hbm %s1151_s2, %s649_s30 }
  0x5a   : > { %v227_v7 = vrot.slane %v226_v5, 4  ;;  %s527_s19 = sshll.u32 %s213_s7, 4  ;;  %s514_s25 = scalar_lea.sflag [#allocation7], %s1073_s15  ;;  %s1098_s19 = int_to_ptr.vmem [resolvable:$true] %s527_s19 }
  0x5b   : > { %v244_v6 = vsel %vm225_vm2, %v243_v4, 0.0  ;;  %s812_s26 = scalar_lea.vmem %s1098_s19, 128  ;;  %p1164_p13 = scmp.ne.s32.totalorder %s1156_s22, 0 }
  0x5c   : > { %v245_v8 = vrot.slane %v244_v6, 4  ;;  %v228_v9 = vadd.f32 %v227_v7, %v226_v5  ;;  %p813_p8 = scmp.ne.s32.totalorder %s1098_s19, %s812_s26  ;;  %s904_s12 = smov [#allocation10]  }
  0x5d   : > { %s816_s3 = sshll.u32 %s904_s12, 4  ;;  %s817_s3 = int_to_ptr.vmem [resolvable:$false] %s816_s3 }
  0x5e   : > { %v246_v10 = vadd.f32 %v245_v8, %v244_v6  ;;  %v229_v11 = vrot.slane %v228_v9, 2  ;;  %v261_v35 = vld [vmem:[#allocation2] sm:$0xf]  ;;  %v339_v36 = vld [vmem:[#allocation3] sm:$0xf]  ;;  %p814_p6 = pnand %p813_p8, %p1164_p13  ;;  %s818_s8 = scalar_lea.vmem %s817_s3, 256 }
  0x5f   : > { %v415_v42 = vld [vmem:[#allocation4] sm:$0xf]  ;;  %p819_p7 = scmp.lt.s32.totalorder %s1098_s19, %s817_s3  ;;  %p820_p10 = scmp.lt.s32.totalorder %s818_s8, %s812_s26 }
  0x60   : > { %v247_v12 = vrot.slane %v246_v10, 2  ;;  %v230_v13 = vadd.f32 %v229_v11, %v228_v9  ;;  %p815_p4 = pneg %p814_p6 }
  0x61   : > { %p821_p0 = por %p820_p10, %p819_p7 }
  0x62   : > { %v248_v14 = vadd.f32 %v247_v12, %v246_v10  ;;  %v231_v15 = vrot.slane %v230_v13, 1 }
  0x63   : > { %p822_p1 = pnand %p821_p0, %p815_p4 }
  0x64   : > { %v249_v16 = vrot.slane %v248_v14, 1  ;;  %v232_v17 = vadd.f32 %v231_v15, %v230_v13 }
  0x66   : > { %v250_v18 = vadd.f32 %v249_v16, %v248_v14  ;;  %744 = vrsqrt.f32 %v232_v17  ;;  %vm235_vm3 = vcmp.eq.f32.partialorder %v232_v17, inf  ;;  %v238_v20 = vand.u32 2147483648, %v232_v17 }
  0x67   : > { %vm237_vm4 = vcmp.eq.f32.partialorder %v232_v17, 0.0 }
  0x68   : > { %746 = vrsqrt.f32 %v250_v18  ;;  %vm253_vm5 = vcmp.eq.f32.partialorder %v250_v18, inf  ;;  %v256_v23 = vand.u32 2147483648, %v250_v18  ;;  %vm255_vm6 = vcmp.eq.f32.partialorder %v250_v18, 0.0 }
  0x70   : > { %v745_v19 = vpop.eup %744 }
  0x71   : > { %v234_v22 = vmul.f32 %v745_v19, %v232_v17 }
  0x72   : > { %v747_v21 = vpop.eup %746 }
  0x73   : > { %v252_v24 = vmul.f32 %v747_v21, %v250_v18  ;;  %v236_v25 = vsel %vm235_vm3, %v232_v17, %v234_v22 }
  0x74   : > { %v239_v26 = vsel %vm237_vm4, %v238_v20, %v236_v25 }
  0x75   : > { %v254_v27 = vsel %vm253_vm5, %v250_v18, %v252_v24  ;;  %v240_v28 = vadd.f32 1e-08, %v239_v26 }
  0x76   : > { %v257_v29 = vsel %vm255_vm6, %v256_v23, %v254_v27 }
  0x77   : > { %v258_v30 = vadd.f32 1e-08, %v257_v29  ;;  %748 = vrcp.f32 %v240_v28 }
  0x79   : > { %750 = vrcp.f32 %v258_v30 }
  0x81   : > { %v749_v31 = vpop.eup %748 }
  0x82   : > { %v242_v33 = vmul.f32 %v749_v31, %v223_v1 }
  0x83   : > { %v751_v32 = vpop.eup %750 }
  0x84   : > { %v260_v34 = vmul.f32 %v751_v32, %v222_v2  ;;  %659 = vmatpush3.xpose.msk.msra.mxu0 %vm262_vm7, %v242_v33 }
  0x85   : > { %668 = vmatprep.subr.mxu0 %v902_v0 }
  0x86   : > { %664 = vmatpush3.xpose.msk.msra.mxu1 %vm262_vm7, %v260_v34 }
  0x87   : > { %661 = vmatmul.mubr.msk.f32.vlgmr.msra.gmra.mrb[0].mxu0 %vm262_vm7, %v242_v33 }
  0x88   : > { %669 = vmatpush3.xpose.msk.msra.mxu0 %vm262_vm7, %v242_v33  ;;  %670 = vmatprep.mubr.msk.f32.mxu0 %vm903_vm1, %v902_v0 }
  0x89   : > { %666 = vmatmul.mubr.msk.f32.vlgmr.msra.gmra.mrb[0].mxu1 %vm262_vm7, %v260_v34 }
  0x8b   : > { %671 = vmatmul.mubr.msk.f32.vlgmr.msra.gmra.mrb[2].mxu0 %vm262_vm7, %v260_v34 }
 0x15a   : > { %v332_v37 = vpop.f32.mrb[0].mxu0 }
 0x15b   : > { %v336_v38 = vadd.f32 %v332_v37, %v261_v35  ;;  %v662_v39 = vpop.f32.mrb[1].mxu0 }
 0x15c   : > { %v409_v40 = vpop.f32.mrb[0].mxu1 }
 0x15d   : > { %v413_v41 = vadd.f32 %v409_v40, %v339_v36  ;;  %v667_v43 = vpop.f32.mrb[1].mxu1  ;;  %338 = vst.msk [vmem:[#allocation2] sm:$0xf] %vm218_vm0, %v336_v38 }
 0x15e   : > { %v482_v44 = vpop.f32.mrb[2].mxu0 }
 0x15f   : > { %414 = vst.msk [vmem:[#allocation3] sm:$0xf] %vm218_vm0, %v413_v41  ;;  %v486_v45 = vadd.f32 %v482_v44, %v415_v42  ;;  %v672_v46 = vpop.f32.mrb[3].mxu0 }
 0x161   : > { %487 = vst.msk [vmem:[#allocation4] sm:$0xf] %vm218_vm0, %v486_v45 }
 0x164   : > { %v491_v47 = vld [vmem:[#allocation2] sm:$0xf] }
 0x165   : > { %v494_v49 = vmul.f32 %v491_v47, %v491_v47 }
 0x166   : > { %v492_v48 = vld [vmem:[#allocation3] sm:$0xf] }
 0x167   : > { %v495_v50 = vmul.f32 %v492_v48, %v492_v48 }
 0x168   : > { %v493_v51 = vld [vmem:[#allocation4] sm:$0xf] }
 0x169   : > { %v497_v52 = vmul.f32 2.0, %v493_v51  ;;  %v496_v53 = vadd.f32 %v495_v50, %v494_v49 }
 0x16b   : > { %v498_v54 = vmul.f32 %v497_v52, %v493_v51 }
 0x16d   : > { %v499_v55 = vsub.f32 %v496_v53, %v498_v54 }
 0x16f   : > { %v500_v56 = vsel %vm218_vm0, %v499_v55, 0.0 }
 0x170   : > { %501 = vadd.xlane.f32.xlu0 %v500_v56 }
 0x1fd   : > { %v502_v57 = vpop.xlane.xlu0 %501 }
 0x1fe   : > { %v503_v58 = vrot.slane %v502_v57, 4 }
 0x200   : > { %v504_v59 = vadd.f32 %v503_v58, %v502_v57 }
 0x202   : > { %v505_v60 = vrot.slane %v504_v59, 2 }
 0x204   : > { %v506_v61 = vadd.f32 %v505_v60, %v504_v59 }
 0x206   : > { %v507_v62 = vrot.slane %v506_v61, 1 }
 0x208   : > { %v508_v63 = vadd.f32 %v507_v62, %v506_v61 }
 0x20a   : > { %673 = vpush %v508_v63 }
 0x23b   : > { %s674_s20 = spop %673 }
 0x23c   : > { %v510_v0 = vstv %s674_s20 }
 0x23d   : > { %512 = vst [vmem:[%s213_s7] sm:$0xff] %v510_v0 }
 0x23e   : > { %825 = shalt.err (!%p822_p1)
}
 0x23f   : > { %s826_s15 = scalar_lea.hbm %s1103_s29, 128  ;;  %s830_s6 = scalar_lea.hbm %s1151_s2, 768 }
 0x240   : > { %p827_p9 = scmp.ne.s32.totalorder %s1103_s29, %s826_s15  ;;  %p831_p5 = scmp.lt.u32.totalorder %s1103_s29, %s1151_s2 }
 0x241   : > { %p832_p12 = scmp.lt.u32.totalorder %s830_s6, %s826_s15  ;;  %p834_p8 = scmp.lt.u32.totalorder %s826_s15, %s1103_s29 }
 0x242   : > { %p828_p11 = pnand %p827_p9, %p1164_p13 }
 0x243   : > { %p833_p3 = por %p832_p12, %p831_p5 }
 0x244   : > { %p829_p2 = pneg %p828_p11 }
 0x245   : > { %p835_p6 = por %p834_p8, %p833_p3 }
 0x247   : > { %p836_p4 = pnand %p835_p6, %p829_p2 }
 0x249   : > { %839 = shalt.err (!%p836_p4)
}
 0x24a   : > { %679 = dma.vmem_to_hbm [thread:$0]  (%p1164_p13), %s1098_s19, 128, %s1103_s29, %s514_s25  }
 0x24b PF: > { %p693_p7 = scmp.ge.s32.totalorder %s898_s14, 2  ;;  %s539_s21 = sand.u32 1, %s878_s9  }
 0x24c   : > { %p1165_p10 = scmp.ne.s32.totalorder %s1157_s24, 0  ;;  %s540_s7 = scalar_lea.sflag [#allocation7], %s539_s21 }
 0x24e   : > { %p689_p0 = pnand %p693_p7, %p1165_p10 }
 0x250   : > { %873 = dma.done.wait (!%p689_p0), %s540_s7, 128  }
 0x251   : > { %875 = vsyncadd (!%p689_p0), %s540_s7, 4294967168  ;;  %s21_s14 = sadd.s32 1, %s898_s14   ;;  %s1166_s9 = smov %s882_s10 }
 0x252   : > { %p18_p1 = scmp.ge.s32.totalorder %s21_s14, 8   ;;  %s1167_s10 = smov %s886_s11 }
 0x253   : > { %s1168_s11 = smov %s976_s23  ;;  %s1169_s12 = smov %s894_s13 }
 0x254   : > { %s1170_s13 = smov %s1172_s17  ;;  %20 = sbr.rel (!%p18_p1) target bundleno = 8 (0x8), region = 94 }
 0x25b   :  { %545 = vsyncpa [#allocation6], 1 }
 0x25c   :  { %547 = vsyncpa [#allocation6 + $0x1], 1 }
 0x25d   :  { %548 = vsyncpa [#allocation9], 1 }
 0x25e   :  { %550 = vsyncpa [#allocation9 + $0x1], 1 }
 0x25f   :  { %551 = vsyncpa [#allocation7], 1 }
 0x260   :  { %553 = vsyncpa [#allocation7 + $0x1], 1 }

</bundles_post_ra>
